<compile_context>
chip_gen: v6e
topology: v6e:2x2x1
jax: 0.10.0
libtpu: 0.0.40
codegen_flags: <defaults>
</compile_context>

<pallas_src>
import jax
import jax.numpy as jnp
from jax.experimental import pallas as pl
from jax.experimental.pallas import tpu as pltpu

_LANE = 128
_TB_MAX = 8192       # lanes per grid step; f32 tile ~256 KiB in/out -> fits all gens
_PALLAS_MIN_B = 128  # below this, plain XLA fusion beats pallas_call launch overhead


def _transf_kernel(x_ref, combined_ref, tvec_ref, o_ref):
    # x_ref:        (1, TB)  per-sample scalars, lane-dense
    # combined_ref: (6, 1)   affine + (zero) bias, grid-resident
    # tvec_ref:     (6, 1)   per-column scale factors, grid-resident
    # o_ref:        (6, TB)
    o_ref[...] = combined_ref[...] + x_ref[...] * tvec_ref[...]


def _round_up(n, m):
    return ((n + m - 1) // m) * m


def _build_params(position, factor, base):
    affine = jnp.asarray(base, dtype=jnp.float32)
    if position == -1:
        tvec = jnp.ones((6,), jnp.float32) * float(factor)
    else:
        tvec = jnp.zeros((6,), jnp.float32).at[position].set(float(factor))
    # 'Yes+Bias' bias is zero-initialized in Transf.__init__ -> fold into affine.
    # TODO(synk): original PyTorch has a typo (`selfs.tfactor`) in the
    # position == -1 'Yes+Bias' branch; we implement the intended semantics
    # (add the zero-initialized bias), which at init equals adding nothing.
    bias = jnp.zeros((6,), jnp.float32)
    return affine + bias, tvec


def transf_forward(x, *, position, factor=1.0,
                   base=(1.0, 0.0, 0.0, 0.0, 1.0, 0.0),
                   learn_factor="No", force_pallas=False):
    """JAX/Pallas equivalent of Transf.forward; returns (B, 6) float32."""
    del learn_factor  # bias part is zero at init; folded into `combined`
    B = x.shape[0]
    combined, tvec = _build_params(position, factor, base)
    x = x.reshape(B).astype(jnp.float32)

    if B < _PALLAS_MIN_B and not force_pallas:
        # Tiny batch: a 6*B-element FMA fuses in XLA; skip kernel launch overhead.
        return combined[None, :] + x[:, None] * tvec[None, :]

    # Lane-dense, B-tiled layout.  Pad B so every block is full-width.
    tb = min(_TB_MAX, _round_up(B, _LANE))
    b_pad = _round_up(B, tb)
    x_pad = jnp.zeros((1, b_pad), jnp.float32).at[0, :B].set(x)
    combined2 = combined.reshape(6, 1)
    tvec2 = tvec.reshape(6, 1)

    out = pl.pallas_call(
        _transf_kernel,
        out_shape=jax.ShapeDtypeStruct((6, b_pad), jnp.float32),
        grid=(b_pad // tb,),
        in_specs=[
            pl.BlockSpec((1, tb), lambda i: (0, i)),   # x: tiled along lanes
            pl.BlockSpec((6, 1), lambda i: (0, 0)),    # combined: resident
            pl.BlockSpec((6, 1), lambda i: (0, 0)),    # tvec: resident
        ],
        out_specs=pl.BlockSpec((6, tb), lambda i: (0, i)),
        compiler_params=pltpu.CompilerParams(
            dimension_semantics=("parallel",)),        # megacore sharding on v7x
    )(x_pad, combined2, tvec2)

    # Slice off padding and restore the PyTorch (B, 6) output contract.
    return out[:, :B].T


if __name__ == "__main__":
    key0, key1 = jax.random.split(jax.random.PRNGKey(0))

    def ref(xv, position, factor):
        affine = jnp.asarray([1, 0, 0, 0, 1, 0], jnp.float32)
        if position == -1:
            tvec = jnp.ones((6,), jnp.float32) * factor
        else:
            tvec = jnp.zeros((6,), jnp.float32).at[position].set(factor)
        return affine[None, :] + xv[:, None] * tvec[None, :]

    # Case 1: Pallas path, B a multiple of 128, one-hot position, 'Yes+Bias'.
    B1 = 2048
    x1 = jax.random.uniform(key0, (B1,), dtype=jnp.float32)
    out1 = jax.block_until_ready(
        transf_forward(x1, position=2, factor=0.5, learn_factor="Yes+Bias"))
    assert out1.shape == (B1, 6)
    assert jnp.allclose(out1, ref(x1, 2, 0.5), atol=1e-6), "mismatch position=2"

    # Case 2: Pallas path, ragged B (exercises lane padding), position=-1.
    B2 = 1157
    x2 = jax.random.uniform(key1, (B2,), dtype=jnp.float32)
    out2 = jax.block_until_ready(
        transf_forward(x2, position=-1, factor=1.0, force_pallas=True))
    assert out2.shape == (B2, 6)
    assert jnp.allclose(out2, ref(x2, -1, 1.0), atol=1e-6), "mismatch position=-1"

    # Case 3: tiny batch takes the plain-XLA fallback path.
    B3 = 8
    x3 = jax.random.uniform(jax.random.PRNGKey(3), (B3,), dtype=jnp.float32)
    out3 = jax.block_until_ready(transf_forward(x3, position=4, factor=2.0))
    assert jnp.allclose(out3, ref(x3, 4, 2.0), atol=1e-6), "mismatch small-B path"

    print("KERNEL_OK")
</pallas_src>

<mosaic_0001>
module attributes {stable_mosaic.version = 11 : i64} {
  func.func @_transf_kernel(%arg0: i32, %arg1: memref<1x2048xf32, #tpu.memory_space<vmem>>, %arg2: memref<6x1xf32, #tpu.memory_space<vmem>>, %arg3: memref<6x1xf32, #tpu.memory_space<vmem>>, %arg4: memref<6x2048xf32, #tpu.memory_space<vmem>>) attributes {dimension_semantics = [#tpu.dimension_semantics<parallel>], iteration_bounds = array<i64: 1>, scalar_prefetch = 0 : i64, scratch_operands = 0 : i64, tpu.core_type = #tpu.core_type<tc>, window_params = [{transform_indices = @transform_0, window_bounds = array<i64: 1, 2048>}, {pipeline_mode = #tpu.pipeline_mode<synchronous>, transform_indices = @transform_1, window_bounds = array<i64: 6, 1>}, {pipeline_mode = #tpu.pipeline_mode<synchronous>, transform_indices = @transform_2, window_bounds = array<i64: 6, 1>}, {transform_indices = @transform_3, window_bounds = array<i64: 6, 2048>}]} {
    %c0 = arith.constant 0 : index
    %c0_0 = arith.constant 0 : index
    %0 = vector.load %arg2[%c0, %c0_0] : memref<6x1xf32, #tpu.memory_space<vmem>>, vector<6x1xf32>
    %c0_1 = arith.constant 0 : index
    %c0_2 = arith.constant 0 : index
    %1 = vector.load %arg1[%c0_1, %c0_2] : memref<1x2048xf32, #tpu.memory_space<vmem>>, vector<1x2048xf32>
    %c0_3 = arith.constant 0 : index
    %c0_4 = arith.constant 0 : index
    %2 = vector.load %arg3[%c0_3, %c0_4] : memref<6x1xf32, #tpu.memory_space<vmem>>, vector<6x1xf32>
    %3 = vector.broadcast %1 : vector<1x2048xf32> to vector<6x2048xf32>
    %4 = vector.broadcast %2 : vector<6x1xf32> to vector<6x2048xf32>
    %5 = arith.mulf %3, %4 : vector<6x2048xf32>
    %6 = vector.broadcast %0 : vector<6x1xf32> to vector<6x2048xf32>
    %7 = arith.addf %6, %5 : vector<6x2048xf32>
    %c0_5 = arith.constant 0 : index
    %c0_6 = arith.constant 0 : index
    %8 = vector.load %arg4[%c0_5, %c0_6] : memref<6x2048xf32, #tpu.memory_space<vmem>>, vector<6x2048xf32>
    tpu.vector_store %arg4[%c0_5, %c0_6], %7 {strides = array<i32>} : memref<6x2048xf32, #tpu.memory_space<vmem>>, vector<6x2048xf32>,
    return
  }
  func.func @transform_0(%arg0: i32) -> (i32, i32) {
    %c0_i32 = arith.constant 0 : i32
    %c0_i32_0 = arith.constant 0 : i32
    return %c0_i32, %arg0 : i32, i32
  }
  func.func @transform_1(%arg0: i32) -> (i32, i32) {
    %c0_i32 = arith.constant 0 : i32
    %c0_i32_0 = arith.constant 0 : i32
    %c0_i32_1 = arith.constant 0 : i32
    return %c0_i32, %c0_i32_0 : i32, i32
  }
  func.func @transform_2(%arg0: i32) -> (i32, i32) {
    %c0_i32 = arith.constant 0 : i32
    %c0_i32_0 = arith.constant 0 : i32
    %c0_i32_1 = arith.constant 0 : i32
    return %c0_i32, %c0_i32_0 : i32, i32
  }
  func.func @transform_3(%arg0: i32) -> (i32, i32) {
    %c0_i32 = arith.constant 0 : i32
    %c0_i32_0 = arith.constant 0 : i32
    return %c0_i32, %arg0 : i32, i32
  }
}

</mosaic_0001>

<bundles_post_ra>
// kernel: tpu_custom_call.1
= control target key start
LH: loop header
LB: loop body
LE: loop exit
PB: predicated region body
PF: predicated region fallthrough
CT: control target
= control target key end

     0   :  { %v198_v1 = vmov 0   ;;  %s235_s0 = inlined_call_operand.vmem [shape: f32[1,2048], index: 0, kind: input, shape index: {}]   ;;  %s236_s1 = inlined_call_operand.vmem [shape: f32[6,1], index: 1, kind: input, shape index: {}]   ;;  %s237_s2 = inlined_call_operand.vmem [shape: f32[6,1], index: 2, kind: input, shape index: {}]   ;;  %s238_s3 = inlined_call_operand.hbm [shape: f32[6,2048], index: 3, kind: output, shape index: {}]  }
   0x1   :  { %v18_v0 = vld [vmem:[%s237_s2] sm:$0x3f]  ;;  %175 = vset.pattern.permute.xlu0 %v198_v1 }
   0x2   :  { %8 = vsyncpa [#allocation3], 0  ;;  %103 = vperm.xlu0 %175, %v18_v0   ;;  %v15_v2 = vld [vmem:[%s236_s1] sm:$0x3f]  ;;  %v21_v3 = vlaneseq  ;;  %v17_v14 = vld [vmem:[%s235_s0 + $0x8] sm:$0xff] }
   0x3   :  { %v16_v9 = vld [vmem:[%s235_s0] sm:$0xff]  ;;  %s199_s0 = smov [#allocation2]  }
   0x4   :  { %v22_v4 = vshrl.u32 %v21_v3, 7  ;;  %s165_s1 = sshll.u32 %s199_s0, 4  ;;  %s166_s1 = int_to_ptr.vmem [resolvable:$true] %s165_s1 }
   0x5   :  { %s176_s19 = scalar_lea.vmem %s166_s1, 2048  ;;  %p181_p1 = scmp.lt.s32.totalorder %s166_s1, %s166_s1 }
   0x6   :  { %124 = vperm.xlu0 %175, %v15_v2   ;;  %v23_v5 = vsub.s32 0, %v22_v4  ;;  %v27_v6 = vsub.s32 1, %v22_v4  ;;  %v31_v7 = vsub.s32 2, %v22_v4  ;;  %v35_v8 = vsub.s32 3, %v22_v4  ;;  %p177_p0 = scmp.ne.s32.totalorder %s166_s1, %s176_s19  ;;  %p182_p2 = scmp.lt.s32.totalorder %s176_s19, %s176_s19 }
   0x7   :  { %v39_v10 = vsub.s32 4, %v22_v4  ;;  %v43_v11 = vsub.s32 5, %v22_v4  ;;  %v47_v12 = vsub.s32 6, %v22_v4  ;;  %v51_v13 = vsub.s32 7, %v22_v4 }
   0x8   :  { %v24_v15 = vrot.slane %v16_v9, %v23_v5  ;;  %v28_v16 = vrot.slane %v16_v9, %v27_v6  ;;  %v32_v17 = vrot.slane %v16_v9, %v31_v7  ;;  %v36_v18 = vrot.slane %v16_v9, %v35_v8  ;;  %p183_p3 = por %p182_p2, %p181_p1 }
   0x9   :  { %v40_v19 = vrot.slane %v16_v9, %v39_v10  ;;  %v44_v20 = vrot.slane %v16_v9, %v43_v11  ;;  %v48_v21 = vrot.slane %v16_v9, %v47_v12  ;;  %v52_v22 = vrot.slane %v16_v9, %v51_v13 }
   0xa   :  { %v56_v23 = vrot.slane %v17_v14, %v23_v5  ;;  %v60_v24 = vrot.slane %v17_v14, %v27_v6  ;;  %v64_v25 = vrot.slane %v17_v14, %v31_v7  ;;  %v68_v26 = vrot.slane %v17_v14, %v35_v8  ;;  %p184_p4 = pnand %p183_p3, %p177_p0 }
   0xb   :  { %v72_v28 = vrot.slane %v17_v14, %v39_v10  ;;  %v76_v29 = vrot.slane %v17_v14, %v43_v11  ;;  %v80_v30 = vrot.slane %v17_v14, %v47_v12  ;;  %v84_v31 = vrot.slane %v17_v14, %v51_v13 }
  0x7d   :  { %v104_v27 = vpop.permute.xlu0 %103 }
  0x7e   :  { %v106_v32 = vmul.f32 %v104_v27, %v24_v15  ;;  %v107_v33 = vmul.f32 %v104_v27, %v28_v16  ;;  %v108_v34 = vmul.f32 %v104_v27, %v32_v17  ;;  %v109_v35 = vmul.f32 %v104_v27, %v36_v18 }
  0x7f   :  { %v110_v36 = vmul.f32 %v104_v27, %v40_v19  ;;  %v111_v37 = vmul.f32 %v104_v27, %v44_v20  ;;  %v112_v38 = vmul.f32 %v104_v27, %v48_v21  ;;  %v113_v39 = vmul.f32 %v104_v27, %v52_v22 }
  0x80   :  { %v114_v40 = vmul.f32 %v104_v27, %v56_v23  ;;  %v115_v41 = vmul.f32 %v104_v27, %v60_v24  ;;  %v116_v42 = vmul.f32 %v104_v27, %v64_v25  ;;  %v117_v43 = vmul.f32 %v104_v27, %v68_v26 }
  0x81   :  { %v118_v44 = vmul.f32 %v104_v27, %v72_v28  ;;  %v119_v45 = vmul.f32 %v104_v27, %v76_v29  ;;  %v120_v46 = vmul.f32 %v104_v27, %v80_v30  ;;  %v121_v47 = vmul.f32 %v104_v27, %v84_v31  ;;  %v125_v48 = vpop.permute.xlu0 %124 }
  0x82   :  { %v127_v49 = vadd.f32 %v125_v48, %v106_v32  ;;  %v128_v50 = vadd.f32 %v125_v48, %v107_v33  ;;  %v129_v51 = vadd.f32 %v125_v48, %v108_v34  ;;  %v130_v52 = vadd.f32 %v125_v48, %v109_v35 }
  0x83   :  { %v131_v53 = vadd.f32 %v125_v48, %v110_v36  ;;  %v132_v54 = vadd.f32 %v125_v48, %v111_v37  ;;  %v133_v55 = vadd.f32 %v125_v48, %v112_v38  ;;  %v134_v56 = vadd.f32 %v125_v48, %v113_v39 }
  0x84   :  { %v135_v57 = vadd.f32 %v125_v48, %v114_v40  ;;  %v136_v58 = vadd.f32 %v125_v48, %v115_v41  ;;  %v137_v59 = vadd.f32 %v125_v48, %v116_v42  ;;  %v138_v60 = vadd.f32 %v125_v48, %v117_v43  ;;  %143 = vst [vmem:[#allocation2] sm:$0x3f] %v127_v49 }
  0x85   :  { %144 = vst [vmem:[#allocation2 + $0x8] sm:$0x3f] %v128_v50  ;;  %145 = vst [vmem:[#allocation2 + $0x10] sm:$0x3f] %v129_v51  ;;  %v139_v61 = vadd.f32 %v125_v48, %v118_v44  ;;  %v140_v62 = vadd.f32 %v125_v48, %v119_v45  ;;  %v141_v63 = vadd.f32 %v125_v48, %v120_v46 }
  0x86   :  { %146 = vst [vmem:[#allocation2 + $0x18] sm:$0x3f] %v130_v52  ;;  %v142_v0 = vadd.f32 %v125_v48, %v121_v47  ;;  %147 = vst [vmem:[#allocation2 + $0x20] sm:$0x3f] %v131_v53 }
  0x87   :  { %148 = vst [vmem:[#allocation2 + $0x28] sm:$0x3f] %v132_v54  ;;  %149 = vst [vmem:[#allocation2 + $0x30] sm:$0x3f] %v133_v55 }
  0x88   :  { %150 = vst [vmem:[#allocation2 + $0x38] sm:$0x3f] %v134_v56  ;;  %151 = vst [vmem:[#allocation2 + $0x40] sm:$0x3f] %v135_v57 }
  0x89   :  { %152 = vst [vmem:[#allocation2 + $0x48] sm:$0x3f] %v136_v58  ;;  %153 = vst [vmem:[#allocation2 + $0x50] sm:$0x3f] %v137_v59 }
  0x8a   :  { %154 = vst [vmem:[#allocation2 + $0x58] sm:$0x3f] %v138_v60  ;;  %155 = vst [vmem:[#allocation2 + $0x60] sm:$0x3f] %v139_v61 }
  0x8b   :  { %156 = vst [vmem:[#allocation2 + $0x68] sm:$0x3f] %v140_v62  ;;  %157 = vst [vmem:[#allocation2 + $0x70] sm:$0x3f] %v141_v63 }
  0x8c   :  { %158 = vst [vmem:[#allocation2 + $0x78] sm:$0x3f] %v142_v0 }
  0x8d   :  { %187 = shalt.err (!%p184_p4)
}
  0x8e   :  { %168 = dma.vmem_to_hbm [thread:$0]  %s166_s1, 2048, %s238_s3, [#allocation3]  }
  0x8f   :  { %196 = dma.done.wait [#allocation3], 2048  }
  0x90   :  { %197 = vsyncadd [#allocation3], 4294965248 }
  0x91   :  { %172 = vsyncpa [#allocation3], 1 }

</bundles_post_ra>
